<compile_context>
chip_gen: v7x
topology: tpu7x:2x2x1
jax: 0.10.0
libtpu: 0.0.40
codegen_flags: <defaults>
</compile_context>

<pallas_src>
import jax
import jax.numpy as jnp
from jax.experimental import pallas as pl
from jax.experimental.pallas import tpu as pltpu


def _round_up(x, m):
    return (x + m - 1) // m * m


def fm_kernel(idx_ref, tab_ref, tab2_ref, out_ref):
    """FM second-order interaction with fused (one-hot) embedding gather.

    idx_ref  : (F, tb)        int32 feature ids, batch on the lane axis
    tab_ref  : (D, feat_num)  f32 embedding table, transposed
    tab2_ref : (D, feat_num)  f32 element-wise squared table, transposed
    out_ref  : (1, tb)        f32 FM logit per example (lane-dense)
    """
    F, tb = idx_ref.shape
    D, feat_num = tab_ref.shape

    idx = idx_ref[...]                                               # (F, tb) int32
    iota_v = jax.lax.broadcasted_iota(jnp.int32, (feat_num, tb), 0)  # feature-id rows

    # counts[v, b] = how many fields of example b hit feature v (handles duplicates).
    counts = jnp.zeros((feat_num, tb), jnp.float32)
    for f in range(F):                                               # F is small & static
        counts = counts + jnp.where(iota_v == idx[f:f + 1, :], 1.0, 0.0)

    # sum_f e_f        = table^T     @ counts   -> (D, tb)
    # sum_f (e_f ** 2) = (table^2)^T @ counts   -> (D, tb)
    s = jnp.dot(tab_ref[...], counts, preferred_element_type=jnp.float32)
    q = jnp.dot(tab2_ref[...], counts, preferred_element_type=jnp.float32)

    ix = s * s - q                                                   # (D, tb)
    out = 0.5 * jnp.sum(ix, axis=0, keepdims=True)                   # (1, tb) lane-dense
    out_ref[...] = out.astype(out_ref.dtype)


def fm_pallas(idx_t, tab_t, tab2_t, *, tb):
    """idx_t: (F, Bp) int32, tab_t/tab2_t: (D, feat_num) f32 -> (1, Bp) f32 logits."""
    F, Bp = idx_t.shape
    D, feat_num = tab_t.shape
    assert Bp % tb == 0
    grid = (Bp // tb,)

    # Advisory cost: this op is HBM-bound (indices in, logits out, table once).
    flops_per_ex = 2 * F * feat_num + 2 * (2 * D * feat_num) + 3 * D
    cost = pl.CostEstimate(
        flops=flops_per_ex * Bp,
        transcendentals=0,
        bytes_accessed=idx_t.size * 4 + 2 * tab_t.size * 4 + Bp * 4,
    )

    return pl.pallas_call(
        fm_kernel,
        out_shape=jax.ShapeDtypeStruct((1, Bp), jnp.float32),
        grid_spec=pltpu.PrefetchScalarGridSpec(
            num_scalar_prefetch=0,
            grid=grid,
            in_specs=[
                pl.BlockSpec((F, tb), lambda i: (0, i)),           # indices: batch on lanes
                pl.BlockSpec((D, feat_num), lambda i: (0, 0)),     # whole table, fetched once
                pl.BlockSpec((D, feat_num), lambda i: (0, 0)),     # whole table^2, fetched once
            ],
            out_specs=pl.BlockSpec((1, tb), lambda i: (0, i)),     # lane-dense output blocks
        ),
        compiler_params=pltpu.CompilerParams(
            dimension_semantics=("parallel",),
        ),
        cost_estimate=cost,
    )(idx_t, tab_t, tab2_t)


def fm_forward(x_idx, embedding_table, *, tb=1024):
    """Full FM forward: logit[b] = 0.5 * sum_d[(sum_f e)^2 - sum_f e^2].

    x_idx           : (B, F) integer feature ids
    embedding_table : (feat_num, D) float32 embedding weights (assumed VMEM-resident)
    returns         : (B, 1) float32 logits
    """
    B, F = x_idx.shape
    feat_num, D = embedding_table.shape

    # Batch tile: multiple of 128 lanes, capped by the (padded) batch size.
    tb = max(128, min(_round_up(tb, 128), _round_up(B, 128)))
    Bp = _round_up(B, tb)

    idx_t = jnp.transpose(x_idx.astype(jnp.int32))                 # (F, B), batch on lanes
    if Bp != B:
        idx_t = jnp.pad(idx_t, ((0, 0), (0, Bp - B)))              # pad rows with feature 0

    tab = embedding_table.astype(jnp.float32)
    tab_t = jnp.transpose(tab)                                     # (D, feat_num)
    tab2_t = tab_t * tab_t                                         # (D, feat_num)

    out = fm_pallas(idx_t, tab_t, tab2_t, tb=tb)                   # (1, Bp)
    return out.reshape(Bp)[:B].reshape(B, 1)


def fm_reference(x_idx, embedding_table):
    emb = jnp.take(embedding_table, x_idx, axis=0).astype(jnp.float32)   # (B, F, D)
    s = jnp.sum(emb, axis=1)
    ix = s * s - jnp.sum(emb * emb, axis=1)
    return 0.5 * jnp.sum(ix, axis=-1, keepdims=True)


if __name__ == "__main__":
    # opt = {'latent_dim': 32, 'feat_num': 64, 'field_num': 8}
    batch, field_num, feat_num, latent_dim = 16, 8, 64, 32

    key = jax.random.PRNGKey(0)
    k_emb, k_idx = jax.random.split(key)

    # nn.Embedding default init ~ N(0, 1); deterministic in-script init.
    embedding_table = jax.random.normal(k_emb, (feat_num, latent_dim), dtype=jnp.float32)
    x = jax.random.randint(k_idx, (batch, field_num), 0, feat_num, dtype=jnp.int32)

    out = jax.jit(fm_forward)(x, embedding_table)
    out = jax.block_until_ready(out)

    ref = fm_reference(x, embedding_table)
    assert out.shape == (batch, 1)
    assert jnp.allclose(out, ref, atol=1e-3, rtol=1e-3), float(jnp.max(jnp.abs(out - ref)))

    print("KERNEL_OK")
</pallas_src>

<mosaic_0001>
module attributes {stable_mosaic.version = 11 : i64} {
  func.func @fm_kernel(%arg0: i32, %arg1: memref<8x128xi32, #tpu.memory_space<vmem>>, %arg2: memref<32x64xf32, #tpu.memory_space<vmem>>, %arg3: memref<32x64xf32, #tpu.memory_space<vmem>>, %arg4: memref<1x128xf32, #tpu.memory_space<vmem>>) attributes {dimension_semantics = [#tpu.dimension_semantics<parallel>], iteration_bounds = array<i64: 1>, scalar_prefetch = 0 : i64, scratch_operands = 0 : i64, tpu.core_type = #tpu.core_type<tc>, window_params = [{transform_indices = @transform_0, window_bounds = array<i64: 8, 128>}, {pipeline_mode = #tpu.pipeline_mode<synchronous>, transform_indices = @transform_1, window_bounds = array<i64: 32, 64>}, {pipeline_mode = #tpu.pipeline_mode<synchronous>, transform_indices = @transform_2, window_bounds = array<i64: 32, 64>}, {transform_indices = @transform_3, window_bounds = array<i64: 1, 128>}]} {
    %c0 = arith.constant 0 : index
    %c0_0 = arith.constant 0 : index
    %0 = vector.load %arg1[%c0, %c0_0] : memref<8x128xi32, #tpu.memory_space<vmem>>, vector<8x128xi32>
    %1 = tpu.iota {dimensions = array<i32: 0>} : vector<64x128xi32>
    %cst = arith.constant 0.000000e+00 : f32
    %2 = vector.broadcast %cst : f32 to vector<64x128xf32>
    %3 = vector.extract_strided_slice %0 {offsets = [0, 0], sizes = [1, 128], strides = [1, 1]} : vector<8x128xi32> to vector<1x128xi32>
    %4 = vector.broadcast %3 : vector<1x128xi32> to vector<64x128xi32>
    %5 = arith.cmpi eq, %1, %4 : vector<64x128xi32>
    %cst_1 = arith.constant 1.000000e+00 : f32
    %cst_2 = arith.constant 0.000000e+00 : f32
    %6 = vector.broadcast %cst_1 : f32 to vector<64x128xf32>
    %7 = vector.broadcast %cst_2 : f32 to vector<64x128xf32>
    %8 = arith.select %5, %6, %7 : vector<64x128xi1>, vector<64x128xf32>
    %9 = arith.addf %2, %8 : vector<64x128xf32>
    %10 = vector.extract_strided_slice %0 {offsets = [1, 0], sizes = [1, 128], strides = [1, 1]} : vector<8x128xi32> to vector<1x128xi32>
    %11 = vector.broadcast %10 : vector<1x128xi32> to vector<64x128xi32>
    %12 = arith.cmpi eq, %1, %11 : vector<64x128xi32>
    %cst_3 = arith.constant 1.000000e+00 : f32
    %cst_4 = arith.constant 0.000000e+00 : f32
    %13 = vector.broadcast %cst_3 : f32 to vector<64x128xf32>
    %14 = vector.broadcast %cst_4 : f32 to vector<64x128xf32>
    %15 = arith.select %12, %13, %14 : vector<64x128xi1>, vector<64x128xf32>
    %16 = arith.addf %9, %15 : vector<64x128xf32>
    %17 = vector.extract_strided_slice %0 {offsets = [2, 0], sizes = [1, 128], strides = [1, 1]} : vector<8x128xi32> to vector<1x128xi32>
    %18 = vector.broadcast %17 : vector<1x128xi32> to vector<64x128xi32>
    %19 = arith.cmpi eq, %1, %18 : vector<64x128xi32>
    %cst_5 = arith.constant 1.000000e+00 : f32
    %cst_6 = arith.constant 0.000000e+00 : f32
    %20 = vector.broadcast %cst_5 : f32 to vector<64x128xf32>
    %21 = vector.broadcast %cst_6 : f32 to vector<64x128xf32>
    %22 = arith.select %19, %20, %21 : vector<64x128xi1>, vector<64x128xf32>
    %23 = arith.addf %16, %22 : vector<64x128xf32>
    %24 = vector.extract_strided_slice %0 {offsets = [3, 0], sizes = [1, 128], strides = [1, 1]} : vector<8x128xi32> to vector<1x128xi32>
    %25 = vector.broadcast %24 : vector<1x128xi32> to vector<64x128xi32>
    %26 = arith.cmpi eq, %1, %25 : vector<64x128xi32>
    %cst_7 = arith.constant 1.000000e+00 : f32
    %cst_8 = arith.constant 0.000000e+00 : f32
    %27 = vector.broadcast %cst_7 : f32 to vector<64x128xf32>
    %28 = vector.broadcast %cst_8 : f32 to vector<64x128xf32>
    %29 = arith.select %26, %27, %28 : vector<64x128xi1>, vector<64x128xf32>
    %30 = arith.addf %23, %29 : vector<64x128xf32>
    %31 = vector.extract_strided_slice %0 {offsets = [4, 0], sizes = [1, 128], strides = [1, 1]} : vector<8x128xi32> to vector<1x128xi32>
    %32 = vector.broadcast %31 : vector<1x128xi32> to vector<64x128xi32>
    %33 = arith.cmpi eq, %1, %32 : vector<64x128xi32>
    %cst_9 = arith.constant 1.000000e+00 : f32
    %cst_10 = arith.constant 0.000000e+00 : f32
    %34 = vector.broadcast %cst_9 : f32 to vector<64x128xf32>
    %35 = vector.broadcast %cst_10 : f32 to vector<64x128xf32>
    %36 = arith.select %33, %34, %35 : vector<64x128xi1>, vector<64x128xf32>
    %37 = arith.addf %30, %36 : vector<64x128xf32>
    %38 = vector.extract_strided_slice %0 {offsets = [5, 0], sizes = [1, 128], strides = [1, 1]} : vector<8x128xi32> to vector<1x128xi32>
    %39 = vector.broadcast %38 : vector<1x128xi32> to vector<64x128xi32>
    %40 = arith.cmpi eq, %1, %39 : vector<64x128xi32>
    %cst_11 = arith.constant 1.000000e+00 : f32
    %cst_12 = arith.constant 0.000000e+00 : f32
    %41 = vector.broadcast %cst_11 : f32 to vector<64x128xf32>
    %42 = vector.broadcast %cst_12 : f32 to vector<64x128xf32>
    %43 = arith.select %40, %41, %42 : vector<64x128xi1>, vector<64x128xf32>
    %44 = arith.addf %37, %43 : vector<64x128xf32>
    %45 = vector.extract_strided_slice %0 {offsets = [6, 0], sizes = [1, 128], strides = [1, 1]} : vector<8x128xi32> to vector<1x128xi32>
    %46 = vector.broadcast %45 : vector<1x128xi32> to vector<64x128xi32>
    %47 = arith.cmpi eq, %1, %46 : vector<64x128xi32>
    %cst_13 = arith.constant 1.000000e+00 : f32
    %cst_14 = arith.constant 0.000000e+00 : f32
    %48 = vector.broadcast %cst_13 : f32 to vector<64x128xf32>
    %49 = vector.broadcast %cst_14 : f32 to vector<64x128xf32>
    %50 = arith.select %47, %48, %49 : vector<64x128xi1>, vector<64x128xf32>
    %51 = arith.addf %44, %50 : vector<64x128xf32>
    %52 = vector.extract_strided_slice %0 {offsets = [7, 0], sizes = [1, 128], strides = [1, 1]} : vector<8x128xi32> to vector<1x128xi32>
    %53 = vector.broadcast %52 : vector<1x128xi32> to vector<64x128xi32>
    %54 = arith.cmpi eq, %1, %53 : vector<64x128xi32>
    %cst_15 = arith.constant 1.000000e+00 : f32
    %cst_16 = arith.constant 0.000000e+00 : f32
    %55 = vector.broadcast %cst_15 : f32 to vector<64x128xf32>
    %56 = vector.broadcast %cst_16 : f32 to vector<64x128xf32>
    %57 = arith.select %54, %55, %56 : vector<64x128xi1>, vector<64x128xf32>
    %58 = arith.addf %51, %57 : vector<64x128xf32>
    %c0_17 = arith.constant 0 : index
    %c0_18 = arith.constant 0 : index
    %59 = vector.load %arg2[%c0_17, %c0_18] : memref<32x64xf32, #tpu.memory_space<vmem>>, vector<32x64xf32>
    %cst_19 = arith.constant dense<0.000000e+00> : vector<32x128xf32>
    %60 = tpu.matmul %59, %58, %cst_19 {dimension_numbers = #tpu.dot_dimension_numbers<[1], [0], [0], [1], [0, 0, 1, 1], [], []>} : vector<32x64xf32>, vector<64x128xf32>, vector<32x128xf32> -> vector<32x128xf32>
    %c0_20 = arith.constant 0 : index
    %c0_21 = arith.constant 0 : index
    %61 = vector.load %arg3[%c0_20, %c0_21] : memref<32x64xf32, #tpu.memory_space<vmem>>, vector<32x64xf32>
    %cst_22 = arith.constant dense<0.000000e+00> : vector<32x128xf32>
    %62 = tpu.matmul %61, %58, %cst_22 {dimension_numbers = #tpu.dot_dimension_numbers<[1], [0], [0], [1], [0, 0, 1, 1], [], []>} : vector<32x64xf32>, vector<64x128xf32>, vector<32x128xf32> -> vector<32x128xf32>
    %63 = arith.mulf %60, %60 : vector<32x128xf32>
    %64 = arith.subf %63, %62 : vector<32x128xf32>
    %cst_23 = arith.constant dense<0.000000e+00> : vector<128xf32>
    %65 = vector.multi_reduction <add>, %64, %cst_23 [0] : vector<32x128xf32> to vector<128xf32>
    %66 = vector.shape_cast %65 : vector<128xf32> to vector<1x128xf32>
    %cst_24 = arith.constant 5.000000e-01 : f32
    %67 = vector.broadcast %cst_24 : f32 to vector<1x128xf32>
    %68 = arith.mulf %67, %66 : vector<1x128xf32>
    %c0_25 = arith.constant 0 : index
    %c0_26 = arith.constant 0 : index
    %69 = vector.load %arg4[%c0_25, %c0_26] : memref<1x128xf32, #tpu.memory_space<vmem>>, vector<1x128xf32>
    tpu.vector_store %arg4[%c0_25, %c0_26], %68 {strides = array<i32>} : memref<1x128xf32, #tpu.memory_space<vmem>>, vector<1x128xf32>,
    return
  }
  func.func @transform_0(%arg0: i32) -> (i32, i32) {
    %c0_i32 = arith.constant 0 : i32
    %c0_i32_0 = arith.constant 0 : i32
    return %c0_i32, %arg0 : i32, i32
  }
  func.func @transform_1(%arg0: i32) -> (i32, i32) {
    %c0_i32 = arith.constant 0 : i32
    %c0_i32_0 = arith.constant 0 : i32
    %c0_i32_1 = arith.constant 0 : i32
    return %c0_i32, %c0_i32_0 : i32, i32
  }
  func.func @transform_2(%arg0: i32) -> (i32, i32) {
    %c0_i32 = arith.constant 0 : i32
    %c0_i32_0 = arith.constant 0 : i32
    %c0_i32_1 = arith.constant 0 : i32
    return %c0_i32, %c0_i32_0 : i32, i32
  }
  func.func @transform_3(%arg0: i32) -> (i32, i32) {
    %c0_i32 = arith.constant 0 : i32
    %c0_i32_0 = arith.constant 0 : i32
    return %c0_i32, %arg0 : i32, i32
  }
}

</mosaic_0001>

<bundles_post_ra>
// kernel: fm_forward.1
= control target key start
LH: loop header
LB: loop body
LE: loop exit
PB: predicated region body
PF: predicated region fallthrough
CT: control target
= control target key end

     0   :  { %v15_v0 = vlaneseq  ;;  %vm252_vm0 = vcmask 523264   ;;  %v583_v21 = vmov 0.0   ;;  %s851_s0 = inlined_call_operand.vmem [shape: s32[8,128], index: 0, kind: input, shape index: {}]   ;;  %s852_s1 = inlined_call_operand.vmem [shape: f32[32,64], index: 1, kind: input, shape index: {}]   ;;  %s853_s2 = inlined_call_operand.vmem [shape: f32[32,64], index: 2, kind: input, shape index: {}]   ;;  %s854_s3 = inlined_call_operand.vmem [shape: f32[1,128], index: 3, kind: output, shape index: {}]  }
   0x1   :  { %v248_v1 = vld [vmem:[%s852_s1] sm:$0xff] }
   0x2   :  { %v607_v2 = vshrl.u32 %v15_v0, 7  ;;  %522 = vmatprep.mubr.msk.f32.mxu0 %vm252_vm0, %v248_v1  ;;  %v350_v3 = vld [vmem:[%s853_s2] sm:$0xff] }
   0x3   :  { %v14_v4 = vld [vmem:[%s851_s0] sm:$0xff]  ;;  %544 = vmatprep.mubr.msk.f32.mxu1 %vm252_vm0, %v350_v3 }
   0x4   :  { %v618_v5 = vadd.s32 8, %v607_v2  ;;  %v26_v6 = vsub.s32 0, %v607_v2  ;;  %v54_v7 = vsub.s32 1, %v607_v2  ;;  %v82_v8 = vsub.s32 2, %v607_v2 }
   0x5   :  { %v110_v9 = vsub.s32 3, %v607_v2  ;;  %v138_v10 = vsub.s32 4, %v607_v2  ;;  %v166_v11 = vsub.s32 5, %v607_v2  ;;  %v194_v12 = vsub.s32 6, %v607_v2 }
   0x6   :  { %v627_v13 = vrot.slane %v14_v4, %v26_v6  ;;  %v629_v14 = vrot.slane %v14_v4, %v54_v7  ;;  %v631_v15 = vrot.slane %v14_v4, %v82_v8  ;;  %v222_v16 = vsub.s32 7, %v607_v2 }
   0x7   :  { %v634_v17 = vrot.slane %v14_v4, %v110_v9  ;;  %v636_v18 = vrot.slane %v14_v4, %v138_v10  ;;  %v638_v19 = vrot.slane %v14_v4, %v166_v11  ;;  %v640_v20 = vrot.slane %v14_v4, %v194_v12 }
   0x8   :  { %vm28_vm1 = vcmp.eq.s32.totalorder %v607_v2, %v627_v13  ;;  %vm29_vm2 = vcmp.eq.s32.totalorder %v618_v5, %v627_v13  ;;  %vm56_vm3 = vcmp.eq.s32.totalorder %v607_v2, %v629_v14  ;;  %vm57_vm4 = vcmp.eq.s32.totalorder %v618_v5, %v629_v14 }
   0x9   :  { %v36_v22 = vsel %vm28_vm1, 1.0, %v583_v21  ;;  %v37_v23 = vsel %vm29_vm2, 1.0, %v583_v21  ;;  %v64_v24 = vsel %vm56_vm3, 1.0, %v583_v21  ;;  %v65_v25 = vsel %vm57_vm4, 1.0, %v583_v21 }
   0xa   :  { %v72_v26 = vadd.f32 %v64_v24, %v36_v22  ;;  %v73_v27 = vadd.f32 %v65_v25, %v37_v23  ;;  %vm84_vm5 = vcmp.eq.s32.totalorder %v607_v2, %v631_v15  ;;  %vm85_vm6 = vcmp.eq.s32.totalorder %v618_v5, %v631_v15 }
   0xb   :  { %v92_v28 = vsel %vm84_vm5, 1.0, %v583_v21  ;;  %v93_v29 = vsel %vm85_vm6, 1.0, %v583_v21  ;;  %vm112_vm7 = vcmp.eq.s32.totalorder %v607_v2, %v634_v17  ;;  %vm113_vm8 = vcmp.eq.s32.totalorder %v618_v5, %v634_v17 }
   0xc   :  { %v100_v30 = vadd.f32 %v92_v28, %v72_v26  ;;  %v101_v31 = vadd.f32 %v93_v29, %v73_v27  ;;  %v120_v32 = vsel %vm112_vm7, 1.0, %v583_v21  ;;  %v121_v33 = vsel %vm113_vm8, 1.0, %v583_v21 }
   0xd   :  { %vm140_vm9 = vcmp.eq.s32.totalorder %v607_v2, %v636_v18  ;;  %vm141_vm10 = vcmp.eq.s32.totalorder %v618_v5, %v636_v18  ;;  %vm168_vm11 = vcmp.eq.s32.totalorder %v607_v2, %v638_v19  ;;  %vm169_vm12 = vcmp.eq.s32.totalorder %v618_v5, %v638_v19 }
   0xe   :  { %v128_v34 = vadd.f32 %v120_v32, %v100_v30  ;;  %v129_v35 = vadd.f32 %v121_v33, %v101_v31  ;;  %v148_v36 = vsel %vm140_vm9, 1.0, %v583_v21  ;;  %v149_v37 = vsel %vm141_vm10, 1.0, %v583_v21 }
   0xf   :  { %v176_v38 = vsel %vm168_vm11, 1.0, %v583_v21  ;;  %v177_v39 = vsel %vm169_vm12, 1.0, %v583_v21  ;;  %vm196_vm13 = vcmp.eq.s32.totalorder %v607_v2, %v640_v20  ;;  %vm197_vm14 = vcmp.eq.s32.totalorder %v618_v5, %v640_v20 }
  0x10   :  { %v156_v40 = vadd.f32 %v148_v36, %v128_v34  ;;  %v157_v41 = vadd.f32 %v149_v37, %v129_v35  ;;  %v204_v42 = vsel %vm196_vm13, 1.0, %v583_v21  ;;  %v205_v43 = vsel %vm197_vm14, 1.0, %v583_v21 }
  0x11   :  { %v684_v44 = vrot.slane %v14_v4, %v222_v16  ;;  %v18_v45 = vadd.s32 16, %v607_v2  ;;  %v19_v46 = vadd.s32 24, %v607_v2  ;;  %v689_v47 = vadd.s32 32, %v607_v2 }
  0x12   :  { %v184_v48 = vadd.f32 %v176_v38, %v156_v40  ;;  %v185_v49 = vadd.f32 %v177_v39, %v157_v41  ;;  %v692_v50 = vadd.s32 40, %v607_v2  ;;  %v695_v51 = vadd.s32 48, %v607_v2 }
  0x13   :  { %vm224_vm15 = vcmp.eq.s32.totalorder %v607_v2, %v684_v44  ;;  %vm225_vm1 = vcmp.eq.s32.totalorder %v618_v5, %v684_v44  ;;  %vm30_vm2 = vcmp.eq.s32.totalorder %v18_v45, %v627_v13  ;;  %vm31_vm3 = vcmp.eq.s32.totalorder %v19_v46, %v627_v13 }
  0x14   :  { %v212_v52 = vadd.f32 %v204_v42, %v184_v48  ;;  %v213_v53 = vadd.f32 %v205_v43, %v185_v49  ;;  %v232_v54 = vsel %vm224_vm15, 1.0, %v583_v21  ;;  %v233_v55 = vsel %vm225_vm1, 1.0, %v583_v21 }
  0x15   :  { %v38_v56 = vsel %vm30_vm2, 1.0, %v583_v21  ;;  %v39_v57 = vsel %vm31_vm3, 1.0, %v583_v21  ;;  %vm58_vm4 = vcmp.eq.s32.totalorder %v18_v45, %v629_v14  ;;  %vm59_vm5 = vcmp.eq.s32.totalorder %v19_v46, %v629_v14 }
  0x16   :  { %v240_v58 = vadd.f32 %v232_v54, %v212_v52  ;;  %v241_v59 = vadd.f32 %v233_v55, %v213_v53  ;;  %v66_v60 = vsel %vm58_vm4, 1.0, %v583_v21  ;;  %v67_v61 = vsel %vm59_vm5, 1.0, %v583_v21 }
  0x17   :  { %v74_v62 = vadd.f32 %v66_v60, %v38_v56  ;;  %v75_v63 = vadd.f32 %v67_v61, %v39_v57  ;;  %vm86_vm6 = vcmp.eq.s32.totalorder %v18_v45, %v631_v15  ;;  %vm87_vm7 = vcmp.eq.s32.totalorder %v19_v46, %v631_v15 }
  0x18   :  { %v550_v0 = vpack.c.bf16 %v241_v59, %v240_v58  ;;  %v94_v1 = vsel %vm86_vm6, 1.0, %v583_v21  ;;  %v95_v3 = vsel %vm87_vm7, 1.0, %v583_v21  ;;  %vm114_vm8 = vcmp.eq.s32.totalorder %v18_v45, %v634_v17 }
  0x19   :  { %v102_v4 = vadd.f32 %v94_v1, %v74_v62  ;;  %v103_v5 = vadd.f32 %v95_v3, %v75_v63  ;;  %vm115_vm9 = vcmp.eq.s32.totalorder %v19_v46, %v634_v17  ;;  %v122_v6 = vsel %vm114_vm8, 1.0, %v583_v21 }
  0x1a   :  { %551 = vmatprep.subr.bf16.mxu0 %v550_v0  ;;  %567 = vmatprep.subr.bf16.mxu1 %v550_v0  ;;  %v123_v7 = vsel %vm115_vm9, 1.0, %v583_v21  ;;  %vm142_vm10 = vcmp.eq.s32.totalorder %v18_v45, %v636_v18  ;;  %vm143_vm11 = vcmp.eq.s32.totalorder %v19_v46, %v636_v18  ;;  %vm170_vm12 = vcmp.eq.s32.totalorder %v18_v45, %v638_v19 }
  0x1b   :  { %553 = vmatpush3.bf16.msra.mxu0 %v550_v0  ;;  %569 = vmatpush3.bf16.msra.mxu1 %v550_v0  ;;  %v130_v8 = vadd.f32 %v122_v6, %v102_v4  ;;  %v131_v9 = vadd.f32 %v123_v7, %v103_v5  ;;  %v150_v10 = vsel %vm142_vm10, 1.0, %v583_v21  ;;  %v151_v11 = vsel %vm143_vm11, 1.0, %v583_v21 }
  0x1c   :  { %vm171_vm13 = vcmp.eq.s32.totalorder %v19_v46, %v638_v19  ;;  %v178_v12 = vsel %vm170_vm12, 1.0, %v583_v21  ;;  %vm198_vm14 = vcmp.eq.s32.totalorder %v18_v45, %v640_v20  ;;  %vm199_vm15 = vcmp.eq.s32.totalorder %v19_v46, %v640_v20 }
  0x1d   :  { %v158_v16 = vadd.f32 %v150_v10, %v130_v8  ;;  %v159_v22 = vadd.f32 %v151_v11, %v131_v9  ;;  %v179_v23 = vsel %vm171_vm13, 1.0, %v583_v21  ;;  %v206_v24 = vsel %vm198_vm14, 1.0, %v583_v21 }
  0x1e   :  { %v207_v25 = vsel %vm199_vm15, 1.0, %v583_v21  ;;  %vm226_vm1 = vcmp.eq.s32.totalorder %v18_v45, %v684_v44  ;;  %vm227_vm2 = vcmp.eq.s32.totalorder %v19_v46, %v684_v44  ;;  %vm32_vm3 = vcmp.eq.s32.totalorder %v689_v47, %v627_v13 }
  0x1f   :  { %v186_v26 = vadd.f32 %v178_v12, %v158_v16  ;;  %v187_v27 = vadd.f32 %v179_v23, %v159_v22  ;;  %v234_v28 = vsel %vm226_vm1, 1.0, %v583_v21  ;;  %v235_v29 = vsel %vm227_vm2, 1.0, %v583_v21 }
  0x20   :  { %vm33_vm4 = vcmp.eq.s32.totalorder %v692_v50, %v627_v13  ;;  %v40_v30 = vsel %vm32_vm3, 1.0, %v583_v21  ;;  %vm60_vm5 = vcmp.eq.s32.totalorder %v689_v47, %v629_v14  ;;  %vm61_vm6 = vcmp.eq.s32.totalorder %v692_v50, %v629_v14 }
  0x21   :  { %v214_v31 = vadd.f32 %v206_v24, %v186_v26  ;;  %v215_v32 = vadd.f32 %v207_v25, %v187_v27  ;;  %v41_v33 = vsel %vm33_vm4, 1.0, %v583_v21  ;;  %v68_v34 = vsel %vm60_vm5, 1.0, %v583_v21 }
  0x22   :  { %v69_v35 = vsel %vm61_vm6, 1.0, %v583_v21  ;;  %v76_v36 = vadd.f32 %v68_v34, %v40_v30  ;;  %vm88_vm7 = vcmp.eq.s32.totalorder %v689_v47, %v631_v15  ;;  %vm89_vm8 = vcmp.eq.s32.totalorder %v692_v50, %v631_v15 }
  0x23   :  { %v242_v37 = vadd.f32 %v234_v28, %v214_v31  ;;  %v243_v38 = vadd.f32 %v235_v29, %v215_v32  ;;  %v77_v39 = vadd.f32 %v69_v35, %v41_v33  ;;  %v96_v40 = vsel %vm88_vm7, 1.0, %v583_v21 }
  0x24   :  { %v97_v41 = vsel %vm89_vm8, 1.0, %v583_v21  ;;  %v104_v42 = vadd.f32 %v96_v40, %v76_v36  ;;  %vm116_vm9 = vcmp.eq.s32.totalorder %v689_v47, %v634_v17  ;;  %vm117_vm10 = vcmp.eq.s32.totalorder %v692_v50, %v634_v17 }
  0x25   :  { %v554_v43 = vpack.c.bf16 %v243_v38, %v242_v37  ;;  %v105_v45 = vadd.f32 %v97_v41, %v77_v39  ;;  %v124_v46 = vsel %vm116_vm9, 1.0, %v583_v21  ;;  %v125_v48 = vsel %vm117_vm10, 1.0, %v583_v21  ;;  %v352_v37 = vld [vmem:[%s853_s2 + $0x10] sm:$0xff]  ;;  %v251_v38 = vld [vmem:[%s852_s1 + $0x18] sm:$0xff] }
  0x26   :  { %v132_v49 = vadd.f32 %v124_v46, %v104_v42  ;;  %vm144_vm11 = vcmp.eq.s32.totalorder %v689_v47, %v636_v18  ;;  %vm145_vm12 = vcmp.eq.s32.totalorder %v692_v50, %v636_v18  ;;  %vm172_vm13 = vcmp.eq.s32.totalorder %v689_v47, %v638_v19  ;;  %v353_v39 = vld [vmem:[%s853_s2 + $0x18] sm:$0xff] }
  0x27   :  { %555 = vmatprep.subr.bf16.mxu0 %v554_v43  ;;  %571 = vmatprep.subr.bf16.mxu1 %v554_v43  ;;  %v133_v52 = vadd.f32 %v125_v48, %v105_v45  ;;  %v152_v53 = vsel %vm144_vm11, 1.0, %v583_v21  ;;  %v153_v54 = vsel %vm145_vm12, 1.0, %v583_v21  ;;  %vm173_vm14 = vcmp.eq.s32.totalorder %v692_v50, %v638_v19 }
  0x28   :  { %557 = vmatpush3.bf16.msra.mxu0 %v554_v43  ;;  %573 = vmatpush3.bf16.msra.mxu1 %v554_v43  ;;  %v160_v55 = vadd.f32 %v152_v53, %v132_v49  ;;  %v180_v56 = vsel %vm172_vm13, 1.0, %v583_v21  ;;  %v181_v57 = vsel %vm173_vm14, 1.0, %v583_v21  ;;  %vm200_vm15 = vcmp.eq.s32.totalorder %v689_v47, %v640_v20 }
  0x29   :  { %v161_v58 = vadd.f32 %v153_v54, %v133_v52  ;;  %vm201_vm1 = vcmp.eq.s32.totalorder %v692_v50, %v640_v20  ;;  %v208_v59 = vsel %vm200_vm15, 1.0, %v583_v21  ;;  %vm228_vm2 = vcmp.eq.s32.totalorder %v689_v47, %v684_v44 }
  0x2a   :  { %v188_v60 = vadd.f32 %v180_v56, %v160_v55  ;;  %v209_v61 = vsel %vm201_vm1, 1.0, %v583_v21  ;;  %vm229_vm3 = vcmp.eq.s32.totalorder %v692_v50, %v684_v44  ;;  %v236_v62 = vsel %vm228_vm2, 1.0, %v583_v21 }
  0x2b   :  { %v189_v63 = vadd.f32 %v181_v57, %v161_v58  ;;  %v237_v0 = vsel %vm229_vm3, 1.0, %v583_v21  ;;  %v23_v1 = vadd.s32 56, %v607_v2  ;;  %vm34_vm4 = vcmp.eq.s32.totalorder %v695_v51, %v627_v13 }
  0x2c   :  { %v216_v3 = vadd.f32 %v208_v59, %v188_v60  ;;  %v42_v4 = vsel %vm34_vm4, 1.0, %v583_v21  ;;  %vm62_vm5 = vcmp.eq.s32.totalorder %v695_v51, %v629_v14  ;;  %vm90_vm6 = vcmp.eq.s32.totalorder %v695_v51, %v631_v15 }
  0x2d   :  { %v217_v47 = vadd.f32 %v209_v61, %v189_v63  ;;  %vm35_vm7 = vcmp.eq.s32.totalorder %v23_v1, %v627_v13  ;;  %vm63_vm8 = vcmp.eq.s32.totalorder %v23_v1, %v629_v14  ;;  %v70_v50 = vsel %vm62_vm5, 1.0, %v583_v21 }
  0x2e   :  { %v244_v2 = vadd.f32 %v236_v62, %v216_v3  ;;  %v43_v5 = vsel %vm35_vm7, 1.0, %v583_v21  ;;  %v71_v6 = vsel %vm63_vm8, 1.0, %v583_v21  ;;  %v78_v7 = vadd.f32 %v70_v50, %v42_v4 }
  0x2f   :  { %v245_v8 = vadd.f32 %v237_v0, %v217_v47  ;;  %v79_v9 = vadd.f32 %v71_v6, %v43_v5  ;;  %vm91_vm9 = vcmp.eq.s32.totalorder %v23_v1, %v631_v15  ;;  %v98_v10 = vsel %vm90_vm6, 1.0, %v583_v21 }
  0x30   :  { %v99_v11 = vsel %vm91_vm9, 1.0, %v583_v21  ;;  %v106_v12 = vadd.f32 %v98_v10, %v78_v7  ;;  %vm118_vm10 = vcmp.eq.s32.totalorder %v695_v51, %v634_v17  ;;  %vm119_vm11 = vcmp.eq.s32.totalorder %v23_v1, %v634_v17 }
  0x31   :  { %v558_v13 = vpack.c.bf16 %v245_v8, %v244_v2  ;;  %v107_v14 = vadd.f32 %v99_v11, %v79_v9  ;;  %v126_v16 = vsel %vm118_vm10, 1.0, %v583_v21  ;;  %v127_v22 = vsel %vm119_vm11, 1.0, %v583_v21 }
  0x32   :  { %v134_v23 = vadd.f32 %v126_v16, %v106_v12  ;;  %vm146_vm12 = vcmp.eq.s32.totalorder %v695_v51, %v636_v18  ;;  %vm147_vm13 = vcmp.eq.s32.totalorder %v23_v1, %v636_v18  ;;  %vm174_vm14 = vcmp.eq.s32.totalorder %v695_v51, %v638_v19 }
  0x33   :  { %559 = vmatprep.subr.bf16.mxu0 %v558_v13  ;;  %575 = vmatprep.subr.bf16.mxu1 %v558_v13  ;;  %v135_v15 = vadd.f32 %v127_v22, %v107_v14  ;;  %v154_v17 = vsel %vm146_vm12, 1.0, %v583_v21  ;;  %v155_v24 = vsel %vm147_vm13, 1.0, %v583_v21  ;;  %vm175_vm15 = vcmp.eq.s32.totalorder %v23_v1, %v638_v19 }
  0x34   :  { %561 = vmatpush3.bf16.msra.mxu0 %v558_v13  ;;  %577 = vmatpush3.bf16.msra.mxu1 %v558_v13  ;;  %v162_v25 = vadd.f32 %v154_v17, %v134_v23  ;;  %v182_v26 = vsel %vm174_vm14, 1.0, %v583_v21  ;;  %v183_v27 = vsel %vm175_vm15, 1.0, %v583_v21  ;;  %vm202_vm1 = vcmp.eq.s32.totalorder %v695_v51, %v640_v20 }
  0x35   :  { %v163_v18 = vadd.f32 %v155_v24, %v135_v15  ;;  %vm203_vm2 = vcmp.eq.s32.totalorder %v23_v1, %v640_v20  ;;  %v210_v28 = vsel %vm202_vm1, 1.0, %v583_v21  ;;  %vm230_vm3 = vcmp.eq.s32.totalorder %v695_v51, %v684_v44  ;;  %v249_v51 = vld [vmem:[%s852_s1 + $0x8] sm:$0xff] }
  0x36   :  { %v190_v29 = vadd.f32 %v182_v26, %v162_v25  ;;  %v211_v19 = vsel %vm203_vm2, 1.0, %v583_v21  ;;  %vm231_vm4 = vcmp.eq.s32.totalorder %v23_v1, %v684_v44  ;;  %v238_v31 = vsel %vm230_vm3, 1.0, %v583_v21  ;;  %v351_v44 = vld [vmem:[%s853_s2 + $0x8] sm:$0xff] }
  0x37   :  { %v191_v30 = vadd.f32 %v183_v27, %v163_v18  ;;  %v239_v33 = vsel %vm231_vm4, 1.0, %v583_v21  ;;  %v250_v21 = vld [vmem:[%s852_s1 + $0x10] sm:$0xff] }
  0x38   :  { %v218_v32 = vadd.f32 %v210_v28, %v190_v29 }
  0x39   :  { %v219_v34 = vadd.f32 %v211_v19, %v191_v30 }
  0x3a   :  { %v246_v35 = vadd.f32 %v238_v31, %v218_v32 }
  0x3b   :  { %v247_v36 = vadd.f32 %v239_v33, %v219_v34 }
  0x3d   :  { %v562_v20 = vpack.c.bf16 %v247_v36, %v246_v35 }
  0x3f   :  { %563 = vmatprep.subr.bf16.mxu0 %v562_v20  ;;  %579 = vmatprep.subr.bf16.mxu1 %v562_v20 }
  0x40   :  { %565 = vmatpush3.bf16.msra.mxu0 %v562_v20  ;;  %581 = vmatpush3.bf16.msra.mxu1 %v562_v20 }
  0x43   :  { %523 = vmatmul.mubr.msk.f32.vlgmr.msra.gmra.mrb[0].mxu0 %vm252_vm0, %v249_v51  ;;  %545 = vmatmul.mubr.msk.f32.vlgmr.msra.gmra.mrb[0].mxu1 %vm252_vm0, %v351_v44 }
  0x44   :  { %525 = vmatprep.mubr.msk.f32.mxu0 %vm252_vm0, %v250_v21  ;;  %547 = vmatprep.mubr.msk.f32.mxu1 %vm252_vm0, %v352_v37 }
  0x47   :  { %526 = vmatmul.mubr.msk.f32.gmra.mrb[2].mxu0 %vm252_vm0, %v251_v38  ;;  %548 = vmatmul.mubr.msk.f32.gmra.mrb[2].mxu1 %vm252_vm0, %v353_v39 }
 0x116   :  { %v524_v40 = vpop.f32.mrb[0].mxu0  ;;  %v546_v41 = vpop.f32.mrb[0].mxu1 }
 0x117   :  { %v452_v42 = vmul.f32 %v524_v40, %v524_v40  ;;  %v331_v43 = vpop.f32.mrb[1].mxu0  ;;  %v432_v45 = vpop.f32.mrb[1].mxu1 }
 0x118   :  { %v451_v46 = vmul.f32 %v331_v43, %v331_v43 }
 0x119   :  { %v456_v48 = vsub.f32 %v452_v42, %v546_v41 }
 0x11a   :  { %v455_v49 = vsub.f32 %v451_v46, %v432_v45  ;;  %v527_v52 = vpop.f32.mrb[2].mxu0  ;;  %v549_v53 = vpop.f32.mrb[2].mxu1 }
 0x11b   :  { %v454_v54 = vmul.f32 %v527_v52, %v527_v52  ;;  %v341_v55 = vpop.f32.mrb[3].mxu0  ;;  %v442_v56 = vpop.f32.mrb[3].mxu1 }
 0x11c   :  { %v459_v57 = vadd.f32 %v456_v48, %v455_v49  ;;  %v453_v58 = vmul.f32 %v341_v55, %v341_v55 }
 0x11d   :  { %v458_v59 = vsub.f32 %v454_v54, %v549_v53 }
 0x11e   :  { %v457_v60 = vsub.f32 %v453_v58, %v442_v56 }
 0x120   :  { %v460_v61 = vadd.f32 %v459_v57, %v457_v60 }
 0x122   :  { %v461_v62 = vadd.f32 %v460_v61, %v458_v59 }
 0x124   :  { %v462_v63 = vrot.slane %v461_v62, 4 }
 0x126   :  { %v463_v0 = vadd.f32 %v462_v63, %v461_v62 }
 0x128   :  { %v464_v1 = vrot.slane %v463_v0, 2 }
 0x12a   :  { %v465_v3 = vadd.f32 %v464_v1, %v463_v0 }
 0x12c   :  { %v466_v4 = vrot.slane %v465_v3, 1 }
 0x12e   :  { %v467_v47 = vadd.f32 %v466_v4, %v465_v3 }
 0x130   :  { %v468_v50 = vmul.f32 0.5, %v467_v47 }
 0x132   :  { %469 = vst [vmem:[%s854_s3] sm:$0x1] %v468_v50 }

</bundles_post_ra>
